<compile_context>
chip_gen: v6e
topology: v6e:2x2x1
jax: 0.10.0
libtpu: 0.0.40
codegen_flags: <defaults>
</compile_context>

<pallas_src>
import math
import numpy as np
import jax
import jax.numpy as jnp
from jax.experimental import pallas as pl
from jax.experimental.pallas import tpu as pltpu


# -----------------------------------------------------------------------------
# Init-time glue: real spherical-harmonic (Descoteaux) basis, matching the
# construction in S2ToSignal.__init__ (numpy, runs once, not the hot path).
# -----------------------------------------------------------------------------
def sph_harm_ind_list(sh_degree_max):
    m_list, n_list = [], []
    for l in range(0, sh_degree_max + 1, 2):
        for m in range(-l, l + 1):
            m_list.append(m)
            n_list.append(l)
    return np.asarray(m_list, dtype=np.int64), np.asarray(n_list, dtype=np.int64)


def cart2sphere(x, y, z):
    r = np.sqrt(x * x + y * y + z * z)
    theta = np.arccos(np.clip(z / np.where(r > 0, r, 1.0), -1.0, 1.0))  # polar
    phi = np.arctan2(y, x)                                              # azimuth
    return r, theta, phi


def _assoc_legendre(l, m, x):
    """P_l^m(x) for m >= 0 with Condon-Shortley phase (scipy lpmv convention)."""
    pmm = np.ones_like(x)
    if m > 0:
        somx2 = np.sqrt((1.0 - x) * (1.0 + x))
        fact = 1.0
        for _ in range(m):
            pmm = -pmm * fact * somx2
            fact += 2.0
    if l == m:
        return pmm
    pmmp1 = x * (2 * m + 1) * pmm
    if l == m + 1:
        return pmmp1
    for ll in range(m + 2, l + 1):
        pll = (x * (2 * ll - 1) * pmmp1 - (ll + m - 1) * pmm) / (ll - m)
        pmm, pmmp1 = pmmp1, pll
    return pmmp1


def real_sh_descoteaux_from_index(m, n, theta, phi):
    """Descoteaux real SH basis.  theta/phi: (P, 1); m/n: (K,).  Returns (P, K)."""
    cos_t = np.cos(theta[:, 0])
    az = phi[:, 0]
    P_, K = cos_t.shape[0], m.shape[0]
    out = np.zeros((P_, K), dtype=np.float64)
    for k in range(K):
        l, mm = int(n[k]), int(m[k])
        am = abs(mm)
        norm = math.sqrt((2 * l + 1) / (4.0 * math.pi)
                         * math.factorial(l - am) / math.factorial(l + am))
        plm = _assoc_legendre(l, am, cos_t)
        if mm == 0:
            out[:, k] = norm * plm * np.cos(am * az)                   # Re(Y_l^0)
        elif mm > 0:
            out[:, k] = math.sqrt(2.0) * norm * plm * np.sin(am * az)  # sqrt(2)*Im(Y_l^m)
        else:
            out[:, k] = math.sqrt(2.0) * norm * plm * np.cos(am * az)  # sqrt(2)*Re(Y_l^|m|)
    return out


def build_y_gs(gradients, sh_degree_max):
    """gradients: (TI, TE, shells, n_grad, 3) numpy -> Y_gs (TI, TE, shells, n_sh, n_grad)."""
    m, n = sph_harm_ind_list(sh_degree_max)
    n_sh = sum(2 * l + 1 for l in range(0, sh_degree_max + 1, 2))
    TI, TE, n_shells, n_grad, _ = gradients.shape
    Y_gs = np.zeros((TI, TE, n_shells, n_sh, n_grad), dtype=np.float64)
    for ti in range(TI):
        for te in range(TE):
            for sh in range(n_shells):
                gx = gradients[ti, te, sh, :, 0]
                gy = gradients[ti, te, sh, :, 1]
                gz = gradients[ti, te, sh, :, 2]
                _, theta, phi = cart2sphere(gx, gy, gz)
                Y_gs[ti, te, sh] = real_sh_descoteaux_from_index(
                    m, n, theta[:, None], phi[:, None]).T
    return Y_gs.astype(np.float32)


# -----------------------------------------------------------------------------
# Pallas module
# -----------------------------------------------------------------------------
_TILE_VMEM_BUDGET = 12 * 1024 * 1024     # keep double-buffered tiles + basis well clear
_CHUNK_K_DEFAULT = 512                   # target contraction width per block-diag chunk


class S2ToSignal:
    """Pallas-TPU port of the PyTorch S2ToSignal module.

    forward(x) == einsum('nabcl,abclp->nabpc', x, Y_gs)
    """

    def __init__(self, gradients, sh_degree_max, *, tile_n=1024,
                 compute_dtype=None, chunk_k=_CHUNK_K_DEFAULT):
        gradients = np.asarray(gradients, dtype=np.float64)
        assert gradients.ndim == 5 and gradients.shape[-1] == 3
        self.sh_degree_max = sh_degree_max
        self._tile_n = int(tile_n)
        self._compute_dtype = compute_dtype

        # Non-trainable parameter, built exactly as in the torch module (init-time numpy).
        y = build_y_gs(gradients, sh_degree_max)            # (A, B, C, L, P) float32
        self.Y_gs = jnp.asarray(y)                          # exposed for reference checks
        A, B, C, L, P = y.shape
        self._dims = (A, B, C, L, P)
        AB = A * B
        self._GL = AB * C * L                               # x slab width
        self._GP = AB * P * C                               # output slab width (a,b,p,c order)

        # --- Chunked, column-permuted block-diagonal basis (built once, numpy) ------
        # Chunk unit = whole (a,b) groups so permuted output columns stay contiguous.
        ab_per_chunk = min(AB, max(1, chunk_k // (C * L)))
        yf = y.reshape(AB, C, L, P)
        chunk_ws, bounds = [], []
        for s in range(0, AB, ab_per_chunk):
            e = min(AB, s + ab_per_chunk)
            nab = e - s
            W = np.zeros((nab * C * L, nab * P * C), dtype=np.float32)
            for j in range(nab):
                for c in range(C):
                    rows = slice((j * C + c) * L, (j * C + c + 1) * L)
                    cols = j * P * C + np.arange(P) * C + c   # (a,b,p,c)-ordered columns
                    W[rows, cols] = yf[s + j, c]              # (L, P) block
            Wj = jnp.asarray(W)
            if compute_dtype is not None:
                Wj = Wj.astype(compute_dtype)                 # pre-cast only the small basis
            chunk_ws.append(Wj)
            bounds.append((s * C * L, e * C * L, s * P * C, e * P * C))
        self._chunk_ws = tuple(chunk_ws)
        self._bounds = tuple(bounds)
        self._basis_bytes = sum(int(np.prod(w.shape)) * jnp.dtype(w.dtype).itemsize
                                for w in self._chunk_ws)

    # -------------------------------------------------------------------------
    def __call__(self, x):
        A, B, C, L, P = self._dims
        assert x.ndim == 5 and x.shape[1:] == (A, B, C, L), x.shape
        N = x.shape[0]
        GL, GP = self._GL, self._GP

        # Free contiguous collapse: native layout, no HBM relayout and no wrapper cast.
        x2 = x.reshape(N, GL)
        itemsize = jnp.dtype(x.dtype).itemsize
        sub = 16 if itemsize == 2 else 8

        def tile_bytes(t):
            # double-buffered x tile + double-buffered out tile
            return 2 * t * GL * itemsize + 2 * t * GP * itemsize

        if N <= sub:
            tn = N                                            # single full-dim block
        else:
            # >= 2 grid steps so both v7x TensorCores get work; sublane-aligned.
            tn = min(self._tile_n, max(sub, -(-N // 2)))
            tn = max(sub, (tn // sub) * sub)
            # Shrink tn until double-buffered tiles fit next to the (2x-counted) basis.
            tile_budget = max(_TILE_VMEM_BUDGET - 2 * self._basis_bytes, 4 << 20)
            while tn > sub and tile_bytes(tn) > tile_budget:
                tn = max(sub, ((tn // 2) // sub) * sub)

        grid = (pl.cdiv(N, tn),)
        vmem_limit = int(min(64 << 20,
                             max(32 << 20,
                                 2 * self._basis_bytes + tile_bytes(tn) + (4 << 20))))

        bounds = self._bounds
        compute_dtype = self._compute_dtype

        def kernel(x_ref, *refs):
            w_refs, o_ref = refs[:-1], refs[-1]
            # Static unroll over a handful of chunks; each is one MXU matmul into a
            # contiguous slice of the lane-dense output tile.
            for w_ref, (k0, k1, c0, c1) in zip(w_refs, bounds):
                xs = x_ref[:, k0:k1]
                if compute_dtype is not None:
                    xs = xs.astype(compute_dtype)             # in-kernel cast: no extra HBM pass
                o_ref[:, c0:c1] = jnp.dot(
                    xs, w_ref[...], preferred_element_type=jnp.float32
                ).astype(o_ref.dtype)

        w_specs = [pl.BlockSpec(w.shape, lambda i: (0, 0))    # resident (fetched once)
                   for w in self._chunk_ws]

        out = pl.pallas_call(
            kernel,
            out_shape=jax.ShapeDtypeStruct((N, GP), x.dtype),
            grid=grid,
            in_specs=[pl.BlockSpec((tn, GL), lambda i: (i, 0))] + w_specs,
            out_specs=pl.BlockSpec((tn, GP), lambda i: (i, 0)),
            compiler_params=pltpu.CompilerParams(
                dimension_semantics=("parallel",),            # shard N tiles across TCs
                vmem_limit_bytes=vmem_limit,
            ),
        )(x2, *self._chunk_ws)

        # Columns were permuted at init to (a,b,p,c) order -> free reshape, no transpose.
        return out.reshape(N, A, B, P, C)


# -----------------------------------------------------------------------------
if __name__ == "__main__":
    # Small, forward-consistent shapes
    batch, TI, TE, n_shells, n_grad = 2, 2, 2, 3, 16
    sh_degree_max = 4
    n_sh = sum(2 * l + 1 for l in range(0, sh_degree_max + 1, 2))  # 15

    key = jax.random.PRNGKey(0)
    k_grad, k_x = jax.random.split(key)

    # Deterministic unit gradient directions (TI, TE, shells, n_grad, 3)
    grads = jax.random.normal(k_grad, (TI, TE, n_shells, n_grad, 3), dtype=jnp.float32)
    grads = grads / jnp.linalg.norm(grads, axis=-1, keepdims=True)
    grads_np = np.asarray(grads, dtype=np.float64)

    # SH coefficient input (N, TI, TE, shells, n_sh)
    x = jax.random.normal(k_x, (batch, TI, TE, n_shells, n_sh), dtype=jnp.float32)

    # Default path: single permuted block-diagonal MXU matmul per N-tile (f32).
    model = S2ToSignal(grads_np, sh_degree_max)
    ref = jnp.einsum('nabcl,abclp->nabpc', x, model.Y_gs)

    out = jax.block_until_ready(model(x))
    assert out.shape == (batch, TI, TE, n_grad, n_shells), out.shape
    assert out.dtype == jnp.float32
    np.testing.assert_allclose(np.asarray(out), np.asarray(ref), rtol=1e-5, atol=1e-5)

    # Chunked path (forced multiple chunks, as used automatically for large G).
    model_chunked = S2ToSignal(grads_np, sh_degree_max, chunk_k=1)
    out_c = jax.block_until_ready(model_chunked(x))
    np.testing.assert_allclose(np.asarray(out_c), np.asarray(ref), rtol=1e-5, atol=1e-5)

    # bf16 compute path: basis pre-cast at init, x tile cast INSIDE the kernel.
    model_bf16 = S2ToSignal(grads_np, sh_degree_max, compute_dtype=jnp.bfloat16)
    out_b = jax.block_until_ready(model_bf16(x))
    np.testing.assert_allclose(np.asarray(out_b), np.asarray(ref), rtol=5e-2, atol=5e-2)

    print("KERNEL_OK")
</pallas_src>

<mosaic_0001>
module attributes {stable_mosaic.version = 11 : i64} {
  func.func @kernel(%arg0: i32, %arg1: memref<2x180xf32, #tpu.memory_space<vmem>>, %arg2: memref<180x192xf32, #tpu.memory_space<vmem>>, %arg3: memref<2x192xf32, #tpu.memory_space<vmem>>) attributes {dimension_semantics = [#tpu.dimension_semantics<parallel>], iteration_bounds = array<i64: 1>, scalar_prefetch = 0 : i64, scratch_operands = 0 : i64, tpu.core_type = #tpu.core_type<tc>, window_params = [{transform_indices = @transform_0, window_bounds = array<i64: 2, 180>}, {pipeline_mode = #tpu.pipeline_mode<synchronous>, transform_indices = @transform_1, window_bounds = array<i64: 180, 192>}, {transform_indices = @transform_2, window_bounds = array<i64: 2, 192>}]} {
    %c0 = arith.constant 0 : index
    %c0_0 = arith.constant 0 : index
    %0 = vector.load %arg1[%c0, %c0_0] : memref<2x180xf32, #tpu.memory_space<vmem>>, vector<2x180xf32>
    %c0_1 = arith.constant 0 : index
    %c0_2 = arith.constant 0 : index
    %1 = vector.load %arg2[%c0_1, %c0_2] : memref<180x192xf32, #tpu.memory_space<vmem>>, vector<180x192xf32>
    %cst = arith.constant dense<0.000000e+00> : vector<2x192xf32>
    %2 = tpu.matmul %0, %1, %cst {dimension_numbers = #tpu.dot_dimension_numbers<[1], [0], [0], [1], [0, 0, 1, 1], [], []>} : vector<2x180xf32>, vector<180x192xf32>, vector<2x192xf32> -> vector<2x192xf32>
    %c0_3 = arith.constant 0 : index
    %c0_4 = arith.constant 0 : index
    %3 = vector.load %arg3[%c0_3, %c0_4] : memref<2x192xf32, #tpu.memory_space<vmem>>, vector<2x192xf32>
    tpu.vector_store %arg3[%c0_3, %c0_4], %2 {strides = array<i32>} : memref<2x192xf32, #tpu.memory_space<vmem>>, vector<2x192xf32>,
    return
  }
  func.func @transform_0(%arg0: i32) -> (i32, i32) {
    %c0_i32 = arith.constant 0 : i32
    %c0_i32_0 = arith.constant 0 : i32
    return %arg0, %c0_i32 : i32, i32
  }
  func.func @transform_1(%arg0: i32) -> (i32, i32) {
    %c0_i32 = arith.constant 0 : i32
    %c0_i32_0 = arith.constant 0 : i32
    %c0_i32_1 = arith.constant 0 : i32
    return %c0_i32, %c0_i32_0 : i32, i32
  }
  func.func @transform_2(%arg0: i32) -> (i32, i32) {
    %c0_i32 = arith.constant 0 : i32
    %c0_i32_0 = arith.constant 0 : i32
    return %arg0, %c0_i32 : i32, i32
  }
}

</mosaic_0001>

<bundles_post_ra>
// kernel: tpu_custom_call.1
= control target key start
LH: loop header
LB: loop body
LE: loop exit
PB: predicated region body
PF: predicated region fallthrough
CT: control target
= control target key end

     0   :  { %7 = vsyncpa [#allocation3], 0  ;;  %s318_s0 = inlined_call_operand.hbm [shape: f32[2,180], index: 0, kind: input, shape index: {}]   ;;  %s319_s1 = inlined_call_operand.hbm [shape: f32[180,192], index: 1, kind: input, shape index: {}]   ;;  %s320_s2 = inlined_call_operand.hbm [shape: f32[2,192], index: 2, kind: output, shape index: {}]  }
   0x1   :  { %8 = vsyncpa [#allocation6], 0 }
   0x2   :  { %9 = vsyncpa [#allocation4], 0  ;;  %s283_s9 = smov [#allocation2]   ;;  %s284_s11 = smov [#allocation5]  }
   0x3   :  { %s16_s10 = sshll.u32 %s283_s9, 4  ;;  %s25_s12 = sshll.u32 %s284_s11, 4  ;;  %s17_s10 = int_to_ptr.vmem [resolvable:$true] %s16_s10  ;;  %s26_s12 = int_to_ptr.vmem [resolvable:$true] %s25_s12 }
   0x4   :  { %s225_s13 = scalar_lea.vmem %s17_s10, 64  ;;  %p230_p1 = scmp.lt.s32.totalorder %s17_s10, %s17_s10 }
   0x5   :  { %p226_p0 = scmp.ne.s32.totalorder %s17_s10, %s225_s13  ;;  %p231_p2 = scmp.lt.s32.totalorder %s225_s13, %s225_s13 }
   0x7   :  { %p232_p3 = por %p231_p2, %p230_p1 }
   0x9   :  { %p233_p4 = pnand %p232_p3, %p226_p0 }
   0xb   :  { %236 = shalt.err (!%p233_p4)
}
   0xc   :  { %19 = dma.hbm_to_vmem [thread:$0]  %s318_s0, 64, %s17_s10, [#allocation3]  }
   0xd   :  { %s245_s16 = scalar_lea.vmem %s26_s12, 5888  ;;  %p250_p6 = scmp.lt.s32.totalorder %s26_s12, %s26_s12 }
   0xe   :  { %p246_p5 = scmp.ne.s32.totalorder %s26_s12, %s245_s16  ;;  %p251_p7 = scmp.lt.s32.totalorder %s245_s16, %s245_s16 }
  0x10   :  { %p252_p8 = por %p251_p7, %p250_p6 }
  0x12   :  { %p253_p9 = pnand %p252_p8, %p246_p5 }
  0x14   :  { %256 = shalt.err (!%p253_p9)
}
  0x15   :  { %s285_s17 = smov 256   ;;  %s286_s18 = smov 16  }
  0x16   :  { %31 = dma.hbm_to_vmem [thread:$0]  %s319_s1, 5888, %s26_s12, [#allocation6], %s285_s17, %s285_s17, %s286_s18  }
  0x17   :  { %277 = dma.done.wait [#allocation3], 64  }
  0x18   :  { %278 = vsyncadd [#allocation3], 4294967232 }
  0x19   :  { %279 = dma.done.wait [#allocation6], 5888  }
  0x1a   :  { %280 = vsyncadd [#allocation6], 4294961408  ;;  %v70_v0 = vld [vmem:[#allocation5 + $0xf8] sm:$0xff]  ;;  %v69_v1 = vld [vmem:[#allocation5 + $0xf0] sm:$0xff]  ;;  %vm95_vm0 = vcmask 424960   ;;  %vm98_vm1 = vcmask 1043456   ;;  %v182_v50 = vlaneseq }
  0x1b   :  { %v68_v2 = vld [vmem:[#allocation5 + $0xe8] sm:$0xff]  ;;  %105 = vmatprep.subr.mxu0 %v70_v0  ;;  %v67_v3 = vld [vmem:[#allocation5 + $0xe0] sm:$0xff]  ;;  %v66_v4 = vld [vmem:[#allocation5 + $0xd8] sm:$0xff]  ;;  %v287_v48 = vmov 1983009808   ;;  %vm187_vm2 = vcmask 1041408  }
  0x1c   :  { %106 = vmatpush1.msra.mxu0 %v69_v1  ;;  %v65_v5 = vld [vmem:[#allocation5 + $0xd0] sm:$0xff]  ;;  %v64_v6 = vld [vmem:[#allocation5 + $0xc8] sm:$0xff]  ;;  %v63_v7 = vld [vmem:[#allocation5 + $0xc0] sm:$0xff]  ;;  %v180_v49 = vunpack.c.l.s4 %v287_v48  ;;  %v183_v52 = vshrl.u32 %v182_v50, 7  ;;  %vm188_vm3 = vcmask 519170   ;;  %s288_s0 = smov [#allocation7]  }
  0x1d   :  { %107 = vmatprep.subr.mxu0 %v68_v2  ;;  %v62_v8 = vld [vmem:[#allocation5 + $0xb8] sm:$0xff]  ;;  %v61_v9 = vld [vmem:[#allocation5 + $0xb0] sm:$0xff]  ;;  %v60_v10 = vld [vmem:[#allocation5 + $0xa8] sm:$0xff]  ;;  %s197_s1 = sshll.u32 %s288_s0, 4  ;;  %s198_s1 = int_to_ptr.vmem [resolvable:$true] %s197_s1 }
  0x1e   :  { %108 = vmatpush1.msra.mxu0 %v67_v3  ;;  %v59_v11 = vld [vmem:[#allocation5 + $0xa0] sm:$0xff]  ;;  %v58_v12 = vld [vmem:[#allocation5 + $0x98] sm:$0xff]  ;;  %v57_v13 = vld [vmem:[#allocation5 + $0x90] sm:$0xff]  ;;  %v181_v51 = vunpack.c.0.s8 %v180_v49  ;;  %s257_s21 = scalar_lea.vmem %s198_s1, 64  ;;  %p262_p11 = scmp.lt.s32.totalorder %s198_s1, %s198_s1 }
  0x1f   :  { %109 = vmatprep.subr.mxu0 %v66_v4  ;;  %v56_v14 = vld [vmem:[#allocation5 + $0x88] sm:$0xff]  ;;  %v55_v15 = vld [vmem:[#allocation5 + $0x80] sm:$0xff]  ;;  %v54_v16 = vld [vmem:[#allocation5 + $0x78] sm:$0xff]  ;;  %p258_p10 = scmp.ne.s32.totalorder %s198_s1, %s257_s21  ;;  %p263_p12 = scmp.lt.s32.totalorder %s257_s21, %s257_s21 }
  0x20   :  { %110 = vmatpush1.msra.mxu0 %v65_v5  ;;  %v53_v17 = vld [vmem:[#allocation5 + $0x70] sm:$0xff]  ;;  %v310_v18 = vld.sshfl [vmem:[#allocation2] sm:$0x33 pattern:$0x76325410]  ;;  %v52_v19 = vld [vmem:[#allocation5 + $0x68] sm:$0xff]  ;;  %v184_v54 = vsub.s32 %v181_v51, %v183_v52 }
  0x21   :  { %111 = vmatprep.subr.mxu0 %v64_v6  ;;  %v93_v20 = vcombine.high %v310_v18, %v310_v18  ;;  %v51_v21 = vld [vmem:[#allocation5 + $0x60] sm:$0xff]  ;;  %v50_v22 = vld [vmem:[#allocation5 + $0x58] sm:$0xff]  ;;  %v49_v23 = vld [vmem:[#allocation5 + $0x50] sm:$0xff]  ;;  %p264_p13 = por %p263_p12, %p262_p11 }
  0x22   :  { %112 = vmatpush1.msra.mxu0 %v63_v7  ;;  %v48_v24 = vld [vmem:[#allocation5 + $0x48] sm:$0xff]  ;;  %v47_v25 = vld [vmem:[#allocation5 + $0x40] sm:$0xff]  ;;  %v46_v26 = vld [vmem:[#allocation5 + $0x38] sm:$0xff] }
  0x23   :  { %113 = vmatprep.subr.mxu0 %v62_v8  ;;  %210 = vmatprep.mubr.msk.f32.mxu0 %vm95_vm0, %v93_v20  ;;  %v45_v27 = vld [vmem:[#allocation5 + $0x30] sm:$0xff]  ;;  %v44_v28 = vld [vmem:[#allocation5 + $0x28] sm:$0xff]  ;;  %v43_v29 = vld [vmem:[#allocation5 + $0x20] sm:$0xff]  ;;  %p265_p0 = pnand %p264_p13, %p258_p10 }
  0x24   :  { %114 = vmatpush1.msra.mxu0 %v61_v9  ;;  %v42_v30 = vld [vmem:[#allocation5 + $0x18] sm:$0xff]  ;;  %v41_v31 = vld [vmem:[#allocation5 + $0x10] sm:$0xff]  ;;  %v40_v32 = vld [vmem:[#allocation5 + $0x8] sm:$0xff] }
  0x25   :  { %115 = vmatprep.subr.mxu0 %v60_v10  ;;  %v39_v33 = vld [vmem:[#allocation5] sm:$0xff]  ;;  %v84_v34 = vld [vmem:[#allocation5 + $0x168] sm:$0xf]  ;;  %v82_v36 = vld [vmem:[#allocation5 + $0x158] sm:$0xff] }
  0x26   :  { %116 = vmatpush1.msra.mxu0 %v59_v11  ;;  %v83_v35 = vld [vmem:[#allocation5 + $0x160] sm:$0xf]  ;;  %v81_v37 = vld [vmem:[#allocation5 + $0x150] sm:$0xff]  ;;  %v80_v38 = vld [vmem:[#allocation5 + $0x148] sm:$0xff] }
  0x27   :  { %117 = vmatprep.subr.mxu0 %v58_v12  ;;  %v79_v39 = vld [vmem:[#allocation5 + $0x140] sm:$0xff]  ;;  %v78_v40 = vld [vmem:[#allocation5 + $0x138] sm:$0xff]  ;;  %v77_v41 = vld [vmem:[#allocation5 + $0x130] sm:$0xff] }
  0x28   :  { %118 = vmatpush1.msra.mxu0 %v57_v13  ;;  %v76_v42 = vld [vmem:[#allocation5 + $0x128] sm:$0xff]  ;;  %v75_v43 = vld [vmem:[#allocation5 + $0x120] sm:$0xff]  ;;  %v74_v44 = vld [vmem:[#allocation5 + $0x118] sm:$0xff] }
  0x29   :  { %119 = vmatprep.subr.mxu0 %v56_v14  ;;  %v73_v45 = vld [vmem:[#allocation5 + $0x110] sm:$0xff]  ;;  %v72_v46 = vld [vmem:[#allocation5 + $0x108] sm:$0xff]  ;;  %v71_v47 = vld [vmem:[#allocation5 + $0x100] sm:$0xff] }
  0x2a   :  { %120 = vmatpush1.msra.mxu0 %v55_v15  ;;  %vm189_vm4 = vmor %vm188_vm3, %vm187_vm2 }
  0x2b   :  { %121 = vmatprep.subr.mxu0 %v54_v16 }
  0x2c   :  { %122 = vmatpush1.msra.mxu0 %v53_v17 }
  0x2d   :  { %123 = vmatprep.subr.mxu0 %v52_v19 }
  0x2e   :  { %124 = vmatpush1.msra.mxu0 %v51_v21 }
  0x2f   :  { %125 = vmatprep.subr.mxu0 %v50_v22 }
  0x30   :  { %126 = vmatpush1.msra.mxu0 %v49_v23 }
  0x31   :  { %127 = vmatprep.subr.mxu0 %v48_v24 }
  0x32   :  { %128 = vmatpush1.msra.mxu0 %v47_v25 }
  0x33   :  { %129 = vmatprep.subr.mxu0 %v46_v26 }
  0x34   :  { %130 = vmatpush1.msra.mxu0 %v45_v27 }
  0x35   :  { %131 = vmatprep.subr.mxu0 %v44_v28 }
  0x36   :  { %132 = vmatpush1.msra.mxu0 %v43_v29 }
  0x37   :  { %133 = vmatprep.subr.mxu0 %v42_v30 }
  0x38   :  { %134 = vmatpush1.msra.mxu0 %v41_v31 }
  0x39   :  { %135 = vmatprep.subr.mxu0 %v40_v32 }
  0x3a   :  { %136 = vmatpush1.msra.mxu0 %v39_v33 }
  0x3b   :  { %208 = vmatprep.subr.msk.mxu0 %vm98_vm1, %v84_v34 }
  0x3c   :  { %209 = vmatpush2.msk.msra.mxu0 %vm98_vm1, %v83_v35 }
  0x3d   :  { %157 = vmatprep.subr.mxu0 %v82_v36 }
  0x3e   :  { %158 = vmatpush2.msra.mxu0 %v81_v37 }
  0x3f   :  { %159 = vmatprep.subr.mxu0 %v80_v38 }
  0x40   :  { %160 = vmatpush2.msra.mxu0 %v79_v39 }
  0x41   :  { %161 = vmatprep.subr.mxu0 %v78_v40 }
  0x42   :  { %162 = vmatpush2.msra.mxu0 %v77_v41 }
  0x43   :  { %163 = vmatprep.subr.mxu0 %v76_v42 }
  0x44   :  { %164 = vmatpush2.msra.mxu0 %v75_v43 }
  0x45   :  { %165 = vmatprep.subr.mxu0 %v74_v44 }
  0x46   :  { %166 = vmatpush2.msra.mxu0 %v73_v45 }
  0x47   :  { %167 = vmatprep.subr.mxu0 %v72_v46 }
  0x48   :  { %168 = vmatpush2.msra.mxu0 %v71_v47 }
  0x49   :  { %170 = vmatmul.mubr.f32.vlgmr.msra.gmra.mxu0 %v310_v18 }
 0x109   :  { %v171_v53 = vpop.f32.mrf.mxu0 }
 0x10b   :  { %v173_v55 = vpop.f32.mrf.mxu0 }
 0x10c   :  { %v178_v56 = vcombine.low %v171_v53, %v173_v55 }
 0x10e   :  { %v185_v57 = vrot.slane %v178_v56, %v184_v54 }
 0x110   :  { %190 = vst.msk [vmem:[#allocation7] sm:$0xf] %vm189_vm4, %v185_v57 }
 0x111   :  { %268 = shalt.err (!%p265_p0)
}
 0x112   :  { %200 = dma.vmem_to_hbm [thread:$0]  %s198_s1, 64, %s320_s2, [#allocation4]  }
 0x113   :  { %281 = dma.done.wait [#allocation4], 64  }
 0x114   :  { %282 = vsyncadd [#allocation4], 4294967232 }
 0x115   :  { %204 = vsyncpa [#allocation3], 1 }
 0x116   :  { %205 = vsyncpa [#allocation6], 1 }
 0x117   :  { %206 = vsyncpa [#allocation4], 1 }

</bundles_post_ra>
